<compile_context>
chip_gen: v7x
topology: tpu7x:2x2x1
jax: 0.10.0
libtpu: 0.0.40
codegen_flags: <defaults>
</compile_context>

<pallas_src>
import functools
import math

import jax
import jax.numpy as jnp
from jax.experimental import pallas as pl
from jax.experimental.pallas import tpu as pltpu


def _round_up(x, m):
    return ((x + m - 1) // m) * m


def _ffn_kernel(x_ref, w1_ref, b1_ref, w2_ref, b2_ref, out_ref, *, use_gelu):
    # x_ref:  (tm, in_dim)       compute dtype (bf16 by default)
    # w1_ref: (in_dim, hidden)   compute dtype  (lin1 weight, transposed)
    # b1_ref: (1, hidden)        f32
    # w2_ref: (hidden, out_dim)  compute dtype  (lin2 weight, transposed)
    # b2_ref: (1, out_dim)       f32
    # out_ref:(tm, out_dim)      f32 (lane-dense)
    x = x_ref[...]
    h = jnp.dot(x, w1_ref[...], preferred_element_type=jnp.float32)   # MXU, f32 acc
    h = h + b1_ref[...]
    if use_gelu:
        # exact GELU: 0.5 * x * (1 + erf(x / sqrt(2)))  -- matches the torch.erf formula
        h = 0.5 * h * (1.0 + jax.lax.erf(h * (1.0 / math.sqrt(2.0))))
    else:
        h = jnp.maximum(h, 0.0)
    y = jnp.dot(h.astype(w2_ref.dtype), w2_ref[...],
                preferred_element_type=jnp.float32)                    # MXU, f32 acc
    out_ref[...] = (y + b2_ref[...]).astype(out_ref.dtype)


def transformer_ffn_forward(x, w1, b1, w2, b2, *, gelu_activation=True,
                            dropout=0.0, training=False,
                            tm=256, compute_dtype=jnp.bfloat16):
    """x: (..., in_dim) f32; w1: (hidden, in_dim); b1: (hidden,);
    w2: (out_dim, hidden); b2: (out_dim,)  -- torch nn.Linear layouts."""
    orig_shape = x.shape
    in_dim = int(orig_shape[-1])
    hidden, in_dim_w = int(w1.shape[0]), int(w1.shape[1])
    out_dim, hidden_w = int(w2.shape[0]), int(w2.shape[1])
    assert in_dim_w == in_dim and hidden_w == hidden  # static shape check only

    n_rows = 1
    for d in orig_shape[:-1]:
        n_rows *= int(d)
    x2 = x.reshape(n_rows, in_dim)

    # Row tile: big (default 256) for real workloads, shrunk (8-aligned) for tiny N.
    rows = min(tm, _round_up(n_rows, 8))
    padded_n = _round_up(n_rows, rows)
    if padded_n != n_rows:
        x2 = jnp.pad(x2, ((0, padded_n - n_rows), (0, 0)))

    x2 = x2.astype(compute_dtype)
    w1_t = jnp.transpose(w1).astype(compute_dtype)        # (in_dim, hidden)
    w2_t = jnp.transpose(w2).astype(compute_dtype)        # (hidden, out_dim)
    b1_2 = b1.reshape(1, hidden).astype(jnp.float32)
    b2_2 = b2.reshape(1, out_dim).astype(jnp.float32)

    grid = (padded_n // rows,)
    kernel = functools.partial(_ffn_kernel, use_gelu=gelu_activation)

    out = pl.pallas_call(
        kernel,
        out_shape=jax.ShapeDtypeStruct((padded_n, out_dim), jnp.float32),
        grid_spec=pltpu.PrefetchScalarGridSpec(
            num_scalar_prefetch=0,
            grid=grid,
            in_specs=[
                pl.BlockSpec((rows, in_dim), lambda i: (i, 0)),      # x row tile
                pl.BlockSpec((in_dim, hidden), lambda i: (0, 0)),    # W1^T (resident)
                pl.BlockSpec((1, hidden), lambda i: (0, 0)),         # b1   (resident)
                pl.BlockSpec((hidden, out_dim), lambda i: (0, 0)),   # W2^T (resident)
                pl.BlockSpec((1, out_dim), lambda i: (0, 0)),        # b2   (resident)
            ],
            out_specs=pl.BlockSpec((rows, out_dim), lambda i: (i, 0)),
        ),
        compiler_params=pltpu.CompilerParams(
            dimension_semantics=("parallel",)),
    )(x2, w1_t, b1_2, w2_t, b2_2)

    out = out[:n_rows].reshape(orig_shape[:-1] + (out_dim,))

    if training and dropout > 0.0:
        # TODO(synk): training-mode dropout (pltpu.prng_seed / prng_random_bits mask)
        # not implemented; eval path == F.dropout(training=False) identity.
        raise NotImplementedError("training-mode dropout not implemented")
    return out


if __name__ == "__main__":
    # Small, module-consistent shapes: batch=2, seq=8, in_dim=128, hidden=256, out=128.
    B, S = 2, 8
    IN_DIM, HIDDEN, OUT_DIM = 128, 256, 128
    DROPOUT = 0.1

    key = jax.random.PRNGKey(0)
    kx, kw1, kb1, kw2, kb2 = jax.random.split(key, 5)

    x = jax.random.normal(kx, (B, S, IN_DIM), dtype=jnp.float32)

    # nn.Linear-style uniform init (torch layout: weight is (out_features, in_features)).
    bound1 = 1.0 / math.sqrt(IN_DIM)
    w1 = jax.random.uniform(kw1, (HIDDEN, IN_DIM), jnp.float32, -bound1, bound1)
    b1 = jax.random.uniform(kb1, (HIDDEN,), jnp.float32, -bound1, bound1)
    bound2 = 1.0 / math.sqrt(HIDDEN)
    w2 = jax.random.uniform(kw2, (OUT_DIM, HIDDEN), jnp.float32, -bound2, bound2)
    b2 = jax.random.uniform(kb2, (OUT_DIM,), jnp.float32, -bound2, bound2)

    out = transformer_ffn_forward(x, w1, b1, w2, b2,
                                  gelu_activation=True,
                                  dropout=DROPOUT, training=False,
                                  tm=256, compute_dtype=jnp.bfloat16)
    jax.block_until_ready(out)
    assert out.shape == (B, S, OUT_DIM)
    assert out.dtype == jnp.float32

    # Reference mirroring the kernel's dtype path (bf16 operands, f32 accumulate).
    inv_sqrt2 = 1.0 / math.sqrt(2.0)
    xr = x.reshape(-1, IN_DIM).astype(jnp.bfloat16)
    hr = jnp.dot(xr, w1.T.astype(jnp.bfloat16),
                 preferred_element_type=jnp.float32) + b1[None, :]
    hr = 0.5 * hr * (1.0 + jax.lax.erf(hr * inv_sqrt2))
    yr = jnp.dot(hr.astype(jnp.bfloat16), w2.T.astype(jnp.bfloat16),
                 preferred_element_type=jnp.float32) + b2[None, :]
    ref = yr.reshape(B, S, OUT_DIM)
    assert jnp.allclose(out, ref, atol=5e-3, rtol=5e-3)

    # Loose check against the exact f32 PyTorch-equivalent math (bf16 rounding only).
    hf = x.reshape(-1, IN_DIM) @ w1.T + b1[None, :]
    hf = 0.5 * hf * (1.0 + jax.lax.erf(hf * inv_sqrt2))
    yf = (hf @ w2.T + b2[None, :]).reshape(B, S, OUT_DIM)
    assert jnp.allclose(out, yf, atol=1e-1, rtol=1e-1)

    print("KERNEL_OK")
</pallas_src>

<mosaic_0001>
module attributes {stable_mosaic.version = 11 : i64} {
  func.func @_ffn_kernel(%arg0: i32, %arg1: memref<16x128xbf16, #tpu.memory_space<vmem>>, %arg2: memref<128x256xbf16, #tpu.memory_space<vmem>>, %arg3: memref<1x256xf32, #tpu.memory_space<vmem>>, %arg4: memref<256x128xbf16, #tpu.memory_space<vmem>>, %arg5: memref<1x128xf32, #tpu.memory_space<vmem>>, %arg6: memref<16x128xf32, #tpu.memory_space<vmem>>) attributes {dimension_semantics = [#tpu.dimension_semantics<parallel>], iteration_bounds = array<i64: 1>, scalar_prefetch = 0 : i64, scratch_operands = 0 : i64, tpu.core_type = #tpu.core_type<tc>, window_params = [{transform_indices = @transform_0, window_bounds = array<i64: 16, 128>}, {pipeline_mode = #tpu.pipeline_mode<synchronous>, transform_indices = @transform_1, window_bounds = array<i64: 128, 256>}, {pipeline_mode = #tpu.pipeline_mode<synchronous>, transform_indices = @transform_2, window_bounds = array<i64: 1, 256>}, {pipeline_mode = #tpu.pipeline_mode<synchronous>, transform_indices = @transform_3, window_bounds = array<i64: 256, 128>}, {pipeline_mode = #tpu.pipeline_mode<synchronous>, transform_indices = @transform_4, window_bounds = array<i64: 1, 128>}, {transform_indices = @transform_5, window_bounds = array<i64: 16, 128>}]} {
    %c0 = arith.constant 0 : index
    %c0_0 = arith.constant 0 : index
    %0 = vector.load %arg1[%c0, %c0_0] : memref<16x128xbf16, #tpu.memory_space<vmem>>, vector<16x128xbf16>
    %c0_1 = arith.constant 0 : index
    %c0_2 = arith.constant 0 : index
    %1 = vector.load %arg2[%c0_1, %c0_2] : memref<128x256xbf16, #tpu.memory_space<vmem>>, vector<128x256xbf16>
    %cst = arith.constant dense<0.000000e+00> : vector<16x256xf32>
    %2 = tpu.matmul %0, %1, %cst {dimension_numbers = #tpu.dot_dimension_numbers<[1], [0], [0], [1], [0, 0, 1, 1], [], []>} : vector<16x128xbf16>, vector<128x256xbf16>, vector<16x256xf32> -> vector<16x256xf32>
    %c0_3 = arith.constant 0 : index
    %c0_4 = arith.constant 0 : index
    %3 = vector.load %arg3[%c0_3, %c0_4] : memref<1x256xf32, #tpu.memory_space<vmem>>, vector<1x256xf32>
    %4 = vector.broadcast %3 : vector<1x256xf32> to vector<16x256xf32>
    %5 = arith.addf %2, %4 : vector<16x256xf32>
    %cst_5 = arith.constant 5.000000e-01 : f32
    %6 = vector.broadcast %cst_5 : f32 to vector<16x256xf32>
    %7 = arith.mulf %6, %5 : vector<16x256xf32>
    %cst_6 = arith.constant 0.707106769 : f32
    %8 = vector.broadcast %cst_6 : f32 to vector<16x256xf32>
    %9 = arith.mulf %5, %8 : vector<16x256xf32>
    %10 = math.erf %9 : vector<16x256xf32>
    %cst_7 = arith.constant 1.000000e+00 : f32
    %11 = vector.broadcast %cst_7 : f32 to vector<16x256xf32>
    %12 = arith.addf %11, %10 : vector<16x256xf32>
    %13 = arith.mulf %7, %12 : vector<16x256xf32>
    %14 = arith.truncf %13 : vector<16x256xf32> to vector<16x256xbf16>
    %c0_8 = arith.constant 0 : index
    %c0_9 = arith.constant 0 : index
    %15 = vector.load %arg4[%c0_8, %c0_9] : memref<256x128xbf16, #tpu.memory_space<vmem>>, vector<256x128xbf16>
    %cst_10 = arith.constant dense<0.000000e+00> : vector<16x128xf32>
    %16 = tpu.matmul %14, %15, %cst_10 {dimension_numbers = #tpu.dot_dimension_numbers<[1], [0], [0], [1], [0, 0, 1, 1], [], []>} : vector<16x256xbf16>, vector<256x128xbf16>, vector<16x128xf32> -> vector<16x128xf32>
    %c0_11 = arith.constant 0 : index
    %c0_12 = arith.constant 0 : index
    %17 = vector.load %arg5[%c0_11, %c0_12] : memref<1x128xf32, #tpu.memory_space<vmem>>, vector<1x128xf32>
    %18 = vector.broadcast %17 : vector<1x128xf32> to vector<16x128xf32>
    %19 = arith.addf %16, %18 : vector<16x128xf32>
    %c0_13 = arith.constant 0 : index
    %c0_14 = arith.constant 0 : index
    %20 = vector.load %arg6[%c0_13, %c0_14] : memref<16x128xf32, #tpu.memory_space<vmem>>, vector<16x128xf32>
    tpu.vector_store %arg6[%c0_13, %c0_14], %19 {strides = array<i32>} : memref<16x128xf32, #tpu.memory_space<vmem>>, vector<16x128xf32>,
    return
  }
  func.func @transform_0(%arg0: i32) -> (i32, i32) {
    %c0_i32 = arith.constant 0 : i32
    %c0_i32_0 = arith.constant 0 : i32
    return %arg0, %c0_i32 : i32, i32
  }
  func.func @transform_1(%arg0: i32) -> (i32, i32) {
    %c0_i32 = arith.constant 0 : i32
    %c0_i32_0 = arith.constant 0 : i32
    %c0_i32_1 = arith.constant 0 : i32
    return %c0_i32, %c0_i32_0 : i32, i32
  }
  func.func @transform_2(%arg0: i32) -> (i32, i32) {
    %c0_i32 = arith.constant 0 : i32
    %c0_i32_0 = arith.constant 0 : i32
    %c0_i32_1 = arith.constant 0 : i32
    return %c0_i32, %c0_i32_0 : i32, i32
  }
  func.func @transform_3(%arg0: i32) -> (i32, i32) {
    %c0_i32 = arith.constant 0 : i32
    %c0_i32_0 = arith.constant 0 : i32
    %c0_i32_1 = arith.constant 0 : i32
    return %c0_i32, %c0_i32_0 : i32, i32
  }
  func.func @transform_4(%arg0: i32) -> (i32, i32) {
    %c0_i32 = arith.constant 0 : i32
    %c0_i32_0 = arith.constant 0 : i32
    %c0_i32_1 = arith.constant 0 : i32
    return %c0_i32, %c0_i32_0 : i32, i32
  }
  func.func @transform_5(%arg0: i32) -> (i32, i32) {
    %c0_i32 = arith.constant 0 : i32
    %c0_i32_0 = arith.constant 0 : i32
    return %arg0, %c0_i32 : i32, i32
  }
}

</mosaic_0001>

<bundles_post_ra>
// kernel: tpu_custom_call.1
= control target key start
LH: loop header
LB: loop body
LE: loop exit
PB: predicated region body
PF: predicated region fallthrough
CT: control target
= control target key end

     0   :  { %10 = vsyncpa [#allocation3], 0  ;;  %s747_s0 = inlined_call_operand.hbm [shape: bf16[16,128], index: 0, kind: input, shape index: {}]   ;;  %s748_s1 = inlined_call_operand.hbm [shape: bf16[128,256], index: 1, kind: input, shape index: {}]   ;;  %s749_s2 = inlined_call_operand.vmem [shape: f32[1,256], index: 2, kind: input, shape index: {}]   ;;  %s750_s3 = inlined_call_operand.hbm [shape: bf16[256,128], index: 3, kind: input, shape index: {}]   ;;  %s751_s4 = inlined_call_operand.vmem [shape: f32[1,128], index: 4, kind: input, shape index: {}]   ;;  %s752_s5 = inlined_call_operand.hbm [shape: f32[16,128], index: 5, kind: output, shape index: {}]  }
   0x1   :  { %11 = vsyncpa [#allocation6], 0 }
   0x2   :  { %12 = vsyncpa [#allocation4], 0  ;;  %s648_s18 = smov [#allocation5]   ;;  %s554_s22 = scalar_lea.hbm %s748_s1, 2048 }
   0x3   :  { %s30_s19 = sshll.u32 %s648_s18, 4  ;;  %p555_p0 = scmp.ne.s32.totalorder %s748_s1, %s554_s22  ;;  %s31_s19 = int_to_ptr.vmem [resolvable:$true] %s30_s19 }
   0x4   :  { %p558_p1 = scmp.lt.u32.totalorder %s554_s22, %s748_s1 }
   0x6   :  { %p560_p2 = pnand %p558_p1, %p555_p0 }
   0x8   :  { %563 = shalt.err (!%p560_p2)
}
   0x9   :  { %s564_s27 = scalar_lea.vmem %s31_s19, 2048  ;;  %p569_p4 = scmp.lt.s32.totalorder %s31_s19, %s31_s19 }
   0xa   :  { %p565_p3 = scmp.ne.s32.totalorder %s31_s19, %s564_s27  ;;  %p570_p5 = scmp.lt.s32.totalorder %s564_s27, %s564_s27 }
   0xc   :  { %p571_p6 = por %p570_p5, %p569_p4 }
   0xe   :  { %p572_p7 = pnand %p571_p6, %p565_p3 }
  0x10   :  { %575 = shalt.err (!%p572_p7)
}
  0x11   :  { %s649_s28 = smov 128   ;;  %s650_s29 = smov 8  }
  0x12   :  { %36 = dma.hbm_to_vmem [thread:$0]  %s748_s1, 2048, %s31_s19, [#allocation6], %s649_s28, %s649_s28, %s650_s29  }
  0x13   :  { %s651_s7 = smov [#allocation2]   ;;  %s576_s11 = scalar_lea.hbm %s747_s0, 128 }
  0x14   :  { %s18_s8 = sshll.u32 %s651_s7, 4  ;;  %p577_p8 = scmp.ne.s32.totalorder %s747_s0, %s576_s11  ;;  %s19_s8 = int_to_ptr.vmem [resolvable:$true] %s18_s8 }
  0x15   :  { %p580_p9 = scmp.lt.u32.totalorder %s576_s11, %s747_s0 }
  0x17   :  { %p582_p10 = pnand %p580_p9, %p577_p8 }
  0x19   :  { %585 = shalt.err (!%p582_p10)
}
  0x1a   :  { %s586_s16 = scalar_lea.vmem %s19_s8, 128  ;;  %p591_p12 = scmp.lt.s32.totalorder %s19_s8, %s19_s8 }
  0x1b   :  { %p587_p11 = scmp.ne.s32.totalorder %s19_s8, %s586_s16  ;;  %p592_p13 = scmp.lt.s32.totalorder %s586_s16, %s586_s16 }
  0x1d   :  { %p593_p0 = por %p592_p13, %p591_p12 }
  0x1f   :  { %p594_p1 = pnand %p593_p0, %p587_p11 }
  0x21   :  { %597 = shalt.err (!%p594_p1)
}
  0x22   :  { %s652_s1 = smov 64   ;;  %s653_s17 = smov 4  }
  0x23   :  { %24 = dma.hbm_to_vmem [thread:$0]  %s747_s0, 128, %s19_s8, [#allocation3], %s652_s1, %s652_s1, %s653_s17  }
  0x24   :  { %s654_s20 = smov [#allocation7]   ;;  %s598_s24 = scalar_lea.hbm %s750_s3, 2048 }
  0x25   :  { %s44_s21 = sshll.u32 %s654_s20, 4  ;;  %p599_p2 = scmp.ne.s32.totalorder %s750_s3, %s598_s24  ;;  %s45_s21 = int_to_ptr.vmem [resolvable:$true] %s44_s21 }
  0x26   :  { %p602_p3 = scmp.lt.u32.totalorder %s598_s24, %s750_s3 }
  0x28   :  { %p604_p4 = pnand %p602_p3, %p599_p2 }
  0x2a   :  { %607 = shalt.err (!%p604_p4)
}
  0x2b   :  { %s608_s6 = scalar_lea.vmem %s45_s21, 2048  ;;  %p613_p6 = scmp.lt.s32.totalorder %s45_s21, %s45_s21 }
  0x2c   :  { %p609_p5 = scmp.ne.s32.totalorder %s45_s21, %s608_s6  ;;  %p614_p7 = scmp.lt.s32.totalorder %s608_s6, %s608_s6 }
  0x2e   :  { %p615_p8 = por %p614_p7, %p613_p6 }
  0x30   :  { %p616_p9 = pnand %p615_p8, %p609_p5 }
  0x32   :  { %619 = shalt.err (!%p616_p9)
}
  0x33   :  { %50 = dma.hbm_to_vmem [thread:$0]  %s750_s3, 2048, %s45_s21, [#allocation6], %s652_s1, %s652_s1, %s653_s17  }
  0x34   :  { %642 = dma.done.wait [#allocation3], 128  }
  0x35   :  { %643 = vsyncadd [#allocation3], 4294967168 }
  0x36   :  { %644 = dma.done.wait [#allocation6], 4096  }
  0x37   :  { %645 = vsyncadd [#allocation6], 4294963200  ;;  %v655_v0 = vmov 0   ;;  %v505_v1 = vld [vmem:[#allocation5 + $0x4] ss:$8 sps:$4 sm:$0xff]   ;;  %v529_v21 = vld [vmem:[#allocation2] sm:$0xff]   ;;  %v83_v34 = vlaneseq }
  0x38   :  { %211 = vmatprep.mubr.bf16.mxu0 %v655_v0  ;;  %v507_v2 = vld [vmem:[#allocation5] ss:$8 sps:$4 sm:$0xff]   ;;  %179 = vmatprep.subr.bf16.mxu0 %v505_v1  ;;  %v508_v3 = vld [vmem:[#allocation5 + $0x14] ss:$8 sps:$4 sm:$0xff]   ;;  %v510_v4 = vld [vmem:[#allocation5 + $0x10] ss:$8 sps:$4 sm:$0xff]  }
  0x39   :  { %180 = vmatpush1.bf16.msra.mxu0 %v507_v2  ;;  %v511_v5 = vld [vmem:[#allocation5 + $0x24] ss:$8 sps:$4 sm:$0xff]   ;;  %v513_v6 = vld [vmem:[#allocation5 + $0x20] ss:$8 sps:$4 sm:$0xff]   ;;  %v514_v7 = vld [vmem:[#allocation5 + $0x34] ss:$8 sps:$4 sm:$0xff]  }
  0x3a   :  { %181 = vmatprep.subr.bf16.mxu0 %v508_v3  ;;  %v516_v8 = vld [vmem:[#allocation5 + $0x30] ss:$8 sps:$4 sm:$0xff]   ;;  %v517_v9 = vld [vmem:[#allocation5 + $0x44] ss:$8 sps:$4 sm:$0xff]   ;;  %v519_v11 = vld [vmem:[#allocation5 + $0x40] ss:$8 sps:$4 sm:$0xff]  }
  0x3b   :  { %v530_v10 = vld [vmem:[#allocation7 + $0x40] sm:$0xff]   ;;  %v532_v13 = vld [vmem:[#allocation7 + $0x48] sm:$0xff]   ;;  %v520_v14 = vld [vmem:[#allocation5 + $0x54] ss:$8 sps:$4 sm:$0xff]   ;;  %v84_v35 = vshrl.u32 %v83_v34, 7  ;;  %s656_s10 = smov [#allocation8]  }
  0x3c   :  { %v531_v12 = vld [vmem:[#allocation7] sm:$0xff]   ;;  %474 = vmatprep.subr.bf16.mxu1 %v530_v10  ;;  %v533_v15 = vld [vmem:[#allocation7 + $0x8] sm:$0xff]   ;;  %v522_v16 = vld [vmem:[#allocation5 + $0x50] ss:$8 sps:$4 sm:$0xff]   ;;  %s427_s11 = sshll.u32 %s656_s10, 4  ;;  %s428_s11 = int_to_ptr.vmem [resolvable:$true] %s427_s11 }
  0x3d   :  { %182 = vmatpush1.bf16.msra.mxu0 %v510_v4  ;;  %475 = vmatpush3.bf16.msra.mxu1 %v531_v12  ;;  %v523_v17 = vld [vmem:[#allocation5 + $0x64] ss:$8 sps:$4 sm:$0xff]   ;;  %v525_v18 = vld [vmem:[#allocation5 + $0x60] ss:$8 sps:$4 sm:$0xff]   ;;  %v526_v19 = vld [vmem:[#allocation5 + $0x74] ss:$8 sps:$4 sm:$0xff]   ;;  %p625_p11 = scmp.lt.s32.totalorder %s428_s11, %s428_s11 }
  0x3e   :  { %183 = vmatprep.subr.bf16.mxu0 %v511_v5  ;;  %476 = vmatprep.subr.bf16.mxu1 %v532_v13  ;;  %v528_v20 = vld [vmem:[#allocation5 + $0x70] ss:$8 sps:$4 sm:$0xff]   ;;  %v538_v26 = vld [vmem:[#allocation7 + $0x60] sm:$0xff]   ;;  %v540_v28 = vld [vmem:[#allocation7 + $0x68] sm:$0xff]   ;;  %v85_v36 = vsub.s32 0, %v84_v35  ;;  %v89_v38 = vsub.s32 1, %v84_v35 }
  0x3f   :  { %v534_v22 = vld [vmem:[#allocation7 + $0x50] sm:$0xff]   ;;  %v536_v24 = vld [vmem:[#allocation7 + $0x58] sm:$0xff]   ;;  %v539_v27 = vld [vmem:[#allocation7 + $0x20] sm:$0xff]   ;;  %s620_s12 = scalar_lea.vmem %s428_s11, 256 }
  0x40   :  { %v535_v23 = vld [vmem:[#allocation7 + $0x10] sm:$0xff]   ;;  %v537_v25 = vld [vmem:[#allocation7 + $0x18] sm:$0xff]   ;;  %v541_v29 = vld [vmem:[#allocation7 + $0x28] sm:$0xff]   ;;  %p621_p10 = scmp.ne.s32.totalorder %s428_s11, %s620_s12  ;;  %p626_p12 = scmp.lt.s32.totalorder %s620_s12, %s620_s12 }
  0x41   :  { %184 = vmatpush1.bf16.msra.mxu0 %v513_v6  ;;  %477 = vmatpush3.bf16.msra.mxu1 %v533_v15  ;;  %v542_v30 = vld [vmem:[#allocation7 + $0x70] sm:$0xff]   ;;  %v544_v32 = vld [vmem:[#allocation7 + $0x78] sm:$0xff]  }
  0x42   :  { %185 = vmatprep.subr.bf16.mxu0 %v514_v7  ;;  %478 = vmatprep.subr.bf16.mxu1 %v534_v22  ;;  %v543_v31 = vld [vmem:[#allocation7 + $0x30] sm:$0xff]   ;;  %v545_v33 = vld [vmem:[#allocation7 + $0x38] sm:$0xff]   ;;  %p627_p13 = por %p626_p12, %p625_p11 }
  0x43   :  { %v81_v37 = vld [vmem:[%s749_s2] sm:$0x3] }
  0x44   :  { %v86_v39 = vrot.slane %v81_v37, %v85_v36  ;;  %v90_v40 = vrot.slane %v81_v37, %v89_v38  ;;  %p628_p0 = pnand %p627_p13, %p621_p10 }
  0x45   :  { %186 = vmatpush1.bf16.msra.mxu0 %v516_v8  ;;  %479 = vmatpush3.bf16.msra.mxu1 %v535_v23  ;;  %v457_v8 = vld [vmem:[%s751_s4] ss:$0 sm:$0xff] }
  0x46   :  { %187 = vmatprep.subr.bf16.mxu0 %v517_v9  ;;  %480 = vmatprep.subr.bf16.mxu1 %v536_v24 }
  0x49   :  { %188 = vmatpush1.bf16.msra.mxu0 %v519_v11  ;;  %481 = vmatpush3.bf16.msra.mxu1 %v537_v25 }
  0x4a   :  { %189 = vmatprep.subr.bf16.mxu0 %v520_v14  ;;  %482 = vmatprep.subr.bf16.mxu1 %v538_v26 }
  0x4d   :  { %190 = vmatpush1.bf16.msra.mxu0 %v522_v16  ;;  %483 = vmatpush3.bf16.msra.mxu1 %v539_v27 }
  0x4e   :  { %191 = vmatprep.subr.bf16.mxu0 %v523_v17  ;;  %484 = vmatprep.subr.bf16.mxu1 %v540_v28 }
  0x51   :  { %192 = vmatpush1.bf16.msra.mxu0 %v525_v18  ;;  %485 = vmatpush3.bf16.msra.mxu1 %v541_v29 }
  0x52   :  { %193 = vmatprep.subr.bf16.mxu0 %v526_v19  ;;  %486 = vmatprep.subr.bf16.mxu1 %v542_v30 }
  0x55   :  { %194 = vmatpush1.bf16.msra.mxu0 %v528_v20  ;;  %487 = vmatpush3.bf16.msra.mxu1 %v543_v31 }
  0x56   :  { %488 = vmatprep.subr.bf16.mxu1 %v544_v32 }
  0x58   :  { %212 = vmatmul.mubr.bf16.vlgmr.msra.gmra.mrb[0].mxu0 %v529_v21 }
  0x59   :  { %489 = vmatpush3.bf16.msra.mxu1 %v545_v33 }
 0x12b   :  { %v213_v41 = vpop.f32.mrb[0].mxu0 }
 0x12c   :  { %v214_v42 = vadd.f32 %v213_v41, %v86_v39  ;;  %v215_v43 = vpop.f32.mrb[1].mxu0 }
 0x12d   :  { %v216_v44 = vadd.f32 %v215_v43, %v90_v40  ;;  %v217_v45 = vpop.f32.mrb[2].mxu0 }
 0x12e   :  { %v226_v46 = vmul.f32 0.70710677, %v214_v42  ;;  %v218_v47 = vadd.f32 %v217_v45, %v86_v39  ;;  %v219_v48 = vpop.f32.mrb[3].mxu0  ;;  %v222_v59 = vmul.f32 0.5, %v214_v42 }
 0x12f   :  { %v227_v49 = vmul.f32 0.70710677, %v216_v44  ;;  %v220_v50 = vadd.f32 %v219_v48, %v90_v40  ;;  %v223_v62 = vmul.f32 0.5, %v216_v44 }
 0x130   :  { %546 = verf.f32 %v226_v46  ;;  %v228_v51 = vmul.f32 0.70710677, %v218_v47  ;;  %v224_v60 = vmul.f32 0.5, %v218_v47 }
 0x131   :  { %548 = verf.f32 %v227_v49  ;;  %v229_v52 = vmul.f32 0.70710677, %v220_v50  ;;  %v225_v63 = vmul.f32 0.5, %v220_v50 }
 0x132   :  { %550 = verf.f32 %v228_v51 }
 0x133   :  { %552 = verf.f32 %v229_v52 }
 0x13a   :  { %v547_v53 = vpop.eup %546 }
 0x13b   :  { %v549_v54 = vpop.eup %548  ;;  %v234_v55 = vadd.f32 1.0, %v547_v53 }
 0x13c   :  { %v551_v56 = vpop.eup %550  ;;  %v235_v57 = vadd.f32 1.0, %v549_v54 }
 0x13d   :  { %v553_v58 = vpop.eup %552  ;;  %v236_v61 = vadd.f32 1.0, %v551_v56  ;;  %v238_v1 = vmul.f32 %v234_v55, %v222_v59 }
 0x13e   :  { %v237_v0 = vadd.f32 1.0, %v553_v58  ;;  %v239_v3 = vmul.f32 %v235_v57, %v223_v62 }
 0x13f   :  { %v240_v2 = vmul.f32 %v236_v61, %v224_v60 }
 0x140   :  { %v241_v4 = vmul.f32 %v237_v0, %v225_v63 }
 0x141   :  { %v242_v5 = vpack.c.bf16 %v240_v2, %v238_v1 }
 0x142   :  { %v243_v6 = vpack.c.bf16 %v241_v4, %v239_v3 }
 0x144   :  { %411 = vmatprep.mubr.bf16.mxu1 %v243_v6 }
 0x145   :  { %412 = vmatmul.mubr.bf16.vlgmr.msra.gmra.mrb[0].mxu1 %v242_v5 }
 0x218   :  { %v490_v7 = vpop.f32.mrb[0].mxu1 }
 0x219   :  { %v491_v9 = vpop.f32.mrb[1].mxu1 }
 0x21a   :  { %v492_v10 = vadd.f32 %v491_v9, %v490_v7  ;;  %v493_v11 = vpop.f32.mrb[2].mxu1 }
 0x21b   :  { %v494_v12 = vpop.f32.mrb[3].mxu1 }
 0x21c   :  { %v414_v13 = vadd.f32 %v492_v10, %v457_v8  ;;  %v495_v14 = vadd.f32 %v494_v12, %v493_v11 }
 0x21e   :  { %420 = vst [vmem:[#allocation8] sm:$0xff] %v414_v13  ;;  %v417_v15 = vadd.f32 %v495_v14, %v457_v8 }
 0x220   :  { %421 = vst [vmem:[#allocation8 + $0x8] sm:$0xff] %v417_v15 }
 0x221   :  { %631 = shalt.err (!%p628_p0)
}
 0x222   :  { %s632_s14 = scalar_lea.hbm %s752_s5, 256 }
 0x223   :  { %p633_p1 = scmp.ne.s32.totalorder %s752_s5, %s632_s14  ;;  %p636_p2 = scmp.lt.u32.totalorder %s632_s14, %s752_s5 }
 0x225   :  { %p638_p3 = pnand %p636_p2, %p633_p1 }
 0x227   :  { %641 = shalt.err (!%p638_p3)
}
 0x228   :  { %433 = dma.vmem_to_hbm [thread:$0]  %s428_s11, 256, %s752_s5, [#allocation4], %s649_s28, %s649_s28, %s650_s29  }
 0x229   :  { %646 = dma.done.wait [#allocation4], 256  }
 0x22a   :  { %647 = vsyncadd [#allocation4], 4294967040 }
 0x22b   :  { %437 = vsyncpa [#allocation3], 1 }
 0x22c   :  { %438 = vsyncpa [#allocation6], 1 }
 0x22d   :  { %439 = vsyncpa [#allocation4], 1 }

</bundles_post_ra>
